<compile_context>
chip_gen: v7x
topology: tpu7x:2x2x1
jax: 0.10.0
libtpu: 0.0.40
codegen_flags: <defaults>
</compile_context>

<pallas_src>
import collections
import numpy as np

import jax
import jax.numpy as jnp
from jax.experimental import pallas as pl
from jax.experimental.pallas import tpu as pltpu

PackedSequence = collections.namedtuple("PackedSequence", ["data", "batch_sizes"])


def _round_up(n, m):
    return ((n + m - 1) // m) * m


# --------------------------------------------------------------------------
# Fast path: fused slice+pad+stack+pack == identity copy of the first
# total_pack rows of x.  Pure BlockSpec auto-pipelining with large blocks.
# --------------------------------------------------------------------------
def _copy_kernel(x_ref, o_ref):
    o_ref[...] = x_ref[...]


def _row_tile(n_rows, row_bytes, dtype):
    """~2 MiB blocks: far past the per-step-overhead knee; in+out double
    buffers stay well under the default scoped VMEM on v5e/v6e/v7x."""
    itemsize = jnp.dtype(dtype).itemsize
    sub = max(8, 32 // itemsize)          # sublane multiple (8 f32 / 16 bf16 / 32 i8)
    tr = max(sub, ((2 * 1024 * 1024) // max(row_bytes, 1)) // sub * sub)
    return min(tr, _round_up(n_rows, sub))


def _packed_copy(x, total_pack):
    """Copy first total_pack rows of x, blocks of shape (tr, D)."""
    total, D = x.shape
    tr = _row_tile(total_pack, D * x.dtype.itemsize, x.dtype)
    return pl.pallas_call(
        _copy_kernel,
        out_shape=jax.ShapeDtypeStruct((total_pack, D), x.dtype),
        grid=(pl.cdiv(total_pack, tr),),
        in_specs=[pl.BlockSpec((tr, D), lambda i: (i, 0))],
        out_specs=pl.BlockSpec((tr, D), lambda i: (i, 0)),
        compiler_params=pltpu.CompilerParams(dimension_semantics=("parallel",)),
    )(x)


def _packed_copy_lanedense(x, total_pack):
    """Same copy, but on a flat (N, 128) view so every store is a full-lane,
    unmasked `vst`.  Only called when D % 128 != 0 and both element counts
    are 128-divisible; both reshapes are contiguous views (no data movement)."""
    total, D = x.shape
    n_in = (total * D) // 128
    n_out = (total_pack * D) // 128
    xf = x.reshape(n_in, 128)
    tr = _row_tile(n_out, 128 * x.dtype.itemsize, x.dtype)
    out = pl.pallas_call(
        _copy_kernel,
        out_shape=jax.ShapeDtypeStruct((n_out, 128), x.dtype),
        grid=(pl.cdiv(n_out, tr),),
        in_specs=[pl.BlockSpec((tr, 128), lambda i: (i, 0))],
        out_specs=pl.BlockSpec((tr, 128), lambda i: (i, 0)),
        compiler_params=pltpu.CompilerParams(dimension_semantics=("parallel",)),
    )(xf)
    return out.reshape(total_pack, D)


# --------------------------------------------------------------------------
# General fallback: per-packed-row gather directly from x (no padded [T,B,D]
# intermediate).  src row + validity are scalar-prefetched; invalid rows
# (pack asked for more rows than exist at that time step) are zeroed.
# Only used when batch_sizes_t and batch_seq_len disagree.
# TODO(synk): coarsen this fallback to per-time-step contiguous slabs
# (BoundedSlice) if the inconsistent-metadata path ever becomes hot.
# --------------------------------------------------------------------------
def _gather_kernel(src_ref, valid_ref, x_ref, o_ref):
    i = pl.program_id(0)
    row = x_ref[...]
    o_ref[...] = jnp.where(valid_ref[i] > 0, row, jnp.zeros_like(row))


def _packed_gather(x, bs, offsets, bs_pack):
    total, D = x.shape
    T_pack = int(bs_pack.shape[0])

    src_list, valid_list = [], []
    for t in range(T_pack):
        npk = int(bs_pack[t])
        nb = int(bs[t])
        off = int(offsets[t])
        b = np.arange(npk)
        valid = b < nb
        src = np.where(valid, off + b, 0)        # invalid rows read row 0, masked to zero
        src_list.append(src)
        valid_list.append(valid)

    src_rows = np.concatenate(src_list).astype(np.int32)
    valid = np.concatenate(valid_list).astype(np.int32)
    total_pack = int(src_rows.shape[0])

    x3 = x.reshape(total, 1, D)                  # unit dim so (1, D) trailing block is legal
    out = pl.pallas_call(
        _gather_kernel,
        out_shape=jax.ShapeDtypeStruct((total_pack, 1, D), x.dtype),
        grid_spec=pltpu.PrefetchScalarGridSpec(
            num_scalar_prefetch=2,
            grid=(total_pack,),
            in_specs=[pl.BlockSpec((1, 1, D), lambda i, src, val: (src[i], 0, 0))],
            out_specs=pl.BlockSpec((1, 1, D), lambda i, src, val: (i, 0, 0)),
        ),
        compiler_params=pltpu.CompilerParams(dimension_semantics=("arbitrary",)),
    )(jnp.asarray(src_rows), jnp.asarray(valid), x3)
    return out.reshape(total_pack, D)


# --------------------------------------------------------------------------
# Public wrapper == Var_to_packed.forward
# --------------------------------------------------------------------------
def var_to_packed(x, batch_sizes_t, batch_seq_len):
    """JAX/Pallas equivalent of Var_to_packed.forward.

    x:              [total_rows, D]  (concatenated per-time-step batches)
    batch_sizes_t:  [T]  batch size at each time step (host ints, like torch)
    batch_seq_len:  [B]  per-sequence lengths (sorted descending)
    """
    bs = np.asarray(batch_sizes_t, dtype=np.int64)
    lens = np.asarray(batch_seq_len, dtype=np.int64)
    T = int(bs.shape[0])
    B = int(bs[0])
    total, D = x.shape
    assert int(bs.sum()) == total, "batch_sizes_t inconsistent with x rows"
    assert int(lens.shape[0]) == B, "need one length per batch element"

    offsets = np.zeros(T, dtype=np.int64)
    offsets[1:] = np.cumsum(bs)[:-1]

    T_pack = int(lens.max())
    assert T_pack <= T, "batch_seq_len exceeds padded time dimension"
    bs_pack = np.array([(lens > t).sum() for t in range(T_pack)], dtype=np.int64)
    total_pack = int(bs_pack.sum())

    if np.array_equal(bs_pack, bs[:T_pack]):
        # Consistent metadata (the SequenceWise use-case): packed data is just
        # the first total_pack rows of x -> single roofline copy kernel.
        if (D % 128 != 0) and ((total * D) % 128 == 0) and ((total_pack * D) % 128 == 0):
            data = _packed_copy_lanedense(x, total_pack)
        else:
            data = _packed_copy(x, total_pack)
    else:
        data = _packed_gather(x, bs, offsets, bs_pack)

    # TODO(synk): torch returns an rnn_util.PackedSequence; emulated as namedtuple.
    return PackedSequence(data=data, batch_sizes=jnp.asarray(bs_pack.astype(np.int32)))


# --------------------------------------------------------------------------
# Demo / correctness check vs a numpy port of the torch forward.
# --------------------------------------------------------------------------
def _torch_reference(x_np, bs, lens):
    B = int(bs[0])
    T = int(len(bs))
    D = x_np.shape[1]
    padded_t = np.zeros((T, B, D), dtype=x_np.dtype)
    start = 0
    for t, bl in enumerate(bs):
        bl = int(bl)
        padded_t[t, :bl] = x_np[start:start + bl]
        start += bl
    T_pack = int(np.max(lens))
    bs_pack = np.array([(np.asarray(lens) > t).sum() for t in range(T_pack)], dtype=np.int64)
    data = np.concatenate([padded_t[t, : int(bs_pack[t]), :] for t in range(T_pack)], axis=0)
    return data, bs_pack


def _make_inputs(key, lens, D):
    lens = np.asarray(lens, dtype=np.int32)
    T = int(lens.max())
    bs = np.array([(lens > t).sum() for t in range(T)], dtype=np.int32)
    total = int(bs.sum())
    x = jax.random.normal(key, (total, D), dtype=jnp.float32)
    return x, bs, lens


if __name__ == "__main__":
    key = jax.random.PRNGKey(0)
    k1, k2 = jax.random.split(key)

    # --- case 1: consistent metadata, D multiple of 128 -> standard copy fast path ---
    lens0 = np.array([16, 12, 9, 5, 3, 3, 2, 1], dtype=np.int32)
    x, bs, lens = _make_inputs(k1, lens0, D=128)
    out = var_to_packed(x, bs, lens)
    jax.block_until_ready(out.data)
    ref_data, ref_bs = _torch_reference(np.asarray(x), bs, lens)
    np.testing.assert_allclose(np.asarray(out.data), ref_data, rtol=1e-6, atol=1e-6)
    np.testing.assert_array_equal(np.asarray(out.batch_sizes), ref_bs)

    # --- case 2: inconsistent lengths -> general gather fallback (zero-padded rows) ---
    lens1 = np.array([16, 13, 9, 6, 3, 3, 2, 1], dtype=np.int32)
    out2 = var_to_packed(x, bs, lens1)
    jax.block_until_ready(out2.data)
    ref_data2, ref_bs2 = _torch_reference(np.asarray(x), bs, lens1)
    np.testing.assert_allclose(np.asarray(out2.data), ref_data2, rtol=1e-6, atol=1e-6)
    np.testing.assert_array_equal(np.asarray(out2.batch_sizes), ref_bs2)

    # --- case 3: consistent metadata, D=64 (not lane-aligned) -> lane-dense repack path ---
    lens3 = np.array([8, 6, 4, 2], dtype=np.int32)            # total = 20 rows, 20*64 % 128 == 0
    x3, bs3, lens3 = _make_inputs(k2, lens3, D=64)
    out3 = var_to_packed(x3, bs3, lens3)
    jax.block_until_ready(out3.data)
    ref_data3, ref_bs3 = _torch_reference(np.asarray(x3), bs3, lens3)
    np.testing.assert_allclose(np.asarray(out3.data), ref_data3, rtol=1e-6, atol=1e-6)
    np.testing.assert_array_equal(np.asarray(out3.batch_sizes), ref_bs3)

    print("KERNEL_OK")
</pallas_src>

<mosaic_0001>
module attributes {stable_mosaic.version = 11 : i64} {
  func.func @_copy_kernel(%arg0: i32, %arg1: memref<56x128xf32, #tpu.memory_space<vmem>>, %arg2: memref<56x128xf32, #tpu.memory_space<vmem>>) attributes {dimension_semantics = [#tpu.dimension_semantics<parallel>], iteration_bounds = array<i64: 1>, scalar_prefetch = 0 : i64, scratch_operands = 0 : i64, tpu.core_type = #tpu.core_type<tc>, window_params = [{transform_indices = @transform_0, window_bounds = array<i64: 56, 128>}, {transform_indices = @transform_1, window_bounds = array<i64: 56, 128>}]} {
    %c0 = arith.constant 0 : index
    %c0_0 = arith.constant 0 : index
    %0 = vector.load %arg1[%c0, %c0_0] : memref<56x128xf32, #tpu.memory_space<vmem>>, vector<56x128xf32>
    %c0_1 = arith.constant 0 : index
    %c0_2 = arith.constant 0 : index
    %1 = vector.load %arg2[%c0_1, %c0_2] : memref<56x128xf32, #tpu.memory_space<vmem>>, vector<56x128xf32>
    tpu.vector_store %arg2[%c0_1, %c0_2], %0 {strides = array<i32>} : memref<56x128xf32, #tpu.memory_space<vmem>>, vector<56x128xf32>,
    return
  }
  func.func @transform_0(%arg0: i32) -> (i32, i32) {
    %c0_i32 = arith.constant 0 : i32
    %c0_i32_0 = arith.constant 0 : i32
    return %arg0, %c0_i32 : i32, i32
  }
  func.func @transform_1(%arg0: i32) -> (i32, i32) {
    %c0_i32 = arith.constant 0 : i32
    %c0_i32_0 = arith.constant 0 : i32
    return %arg0, %c0_i32 : i32, i32
  }
}

</mosaic_0001>

<bundles_post_ra>
// kernel: tpu_custom_call.1
= control target key start
LH: loop header
LB: loop body
LE: loop exit
PB: predicated region body
PF: predicated region fallthrough
CT: control target
= control target key end

     0   :  { %6 = vsyncpa [#allocation3], 0  ;;  %s150_s0 = inlined_call_operand.hbm [shape: f32[51,128], index: 0, kind: input, shape index: {}]   ;;  %s151_s1 = inlined_call_operand.hbm [shape: f32[51,128], index: 1, kind: output, shape index: {}]  }
   0x1   :  { %7 = vsyncpa [#allocation4], 0  ;;  %s106_s6 = smov [#allocation2]   ;;  %s58_s10 = scalar_lea.hbm %s150_s0, 896 }
   0x2   :  { %s13_s7 = sshll.u32 %s106_s6, 4  ;;  %p59_p0 = scmp.ne.s32.totalorder %s150_s0, %s58_s10  ;;  %s14_s7 = int_to_ptr.vmem [resolvable:$true] %s13_s7 }
   0x3   :  { %p62_p1 = scmp.lt.u32.totalorder %s58_s10, %s150_s0 }
   0x5   :  { %p64_p2 = pnand %p62_p1, %p59_p0 }
   0x7   :  { %67 = shalt.err (!%p64_p2)
}
   0x8   :  { %s68_s15 = scalar_lea.vmem %s14_s7, 896  ;;  %p73_p4 = scmp.lt.s32.totalorder %s14_s7, %s14_s7 }
   0x9   :  { %p69_p3 = scmp.ne.s32.totalorder %s14_s7, %s68_s15  ;;  %p74_p5 = scmp.lt.s32.totalorder %s68_s15, %s68_s15 }
   0xb   :  { %p75_p6 = por %p74_p5, %p73_p4 }
   0xd   :  { %p76_p7 = pnand %p75_p6, %p69_p3 }
   0xf   :  { %79 = shalt.err (!%p76_p7)
}
  0x10   :  { %s107_s16 = smov 128   ;;  %s108_s17 = smov 8  }
  0x11   :  { %19 = dma.hbm_to_vmem [thread:$0]  %s150_s0, 896, %s14_s7, [#allocation3], %s107_s16, %s107_s16, %s108_s17  }
  0x12   :  { %102 = dma.done.wait [#allocation3], 896  }
  0x13   :  { %103 = vsyncadd [#allocation3], 4294966400  ;;  %s109_s20 = smov [#allocation5]   ;;  %v23_v0 = vld [vmem:[#allocation2] sm:$0xff]  ;;  %v24_v1 = vld [vmem:[#allocation2 + $0x8] sm:$0xff] }
  0x14   :  { %s42_s21 = sshll.u32 %s109_s20, 4  ;;  %v25_v2 = vld [vmem:[#allocation2 + $0x10] sm:$0xff]  ;;  %30 = vst [vmem:[#allocation5] sm:$0xff] %v23_v0  ;;  %31 = vst [vmem:[#allocation5 + $0x8] sm:$0xff] %v24_v1  ;;  %v26_v3 = vld [vmem:[#allocation2 + $0x18] sm:$0xff]  ;;  %s43_s21 = int_to_ptr.vmem [resolvable:$true] %s42_s21 }
  0x15   :  { %32 = vst [vmem:[#allocation5 + $0x10] sm:$0xff] %v25_v2  ;;  %v27_v4 = vld [vmem:[#allocation2 + $0x20] sm:$0xff]  ;;  %v28_v5 = vld [vmem:[#allocation2 + $0x28] sm:$0xff]  ;;  %33 = vst [vmem:[#allocation5 + $0x18] sm:$0xff] %v26_v3  ;;  %s80_s0 = scalar_lea.vmem %s43_s21, 896  ;;  %p85_p9 = scmp.lt.s32.totalorder %s43_s21, %s43_s21 }
  0x16   :  { %34 = vst [vmem:[#allocation5 + $0x20] sm:$0xff] %v27_v4  ;;  %35 = vst [vmem:[#allocation5 + $0x28] sm:$0xff] %v28_v5  ;;  %v29_v6 = vld [vmem:[#allocation2 + $0x30] sm:$0xff]  ;;  %p81_p8 = scmp.ne.s32.totalorder %s43_s21, %s80_s0  ;;  %p86_p10 = scmp.lt.s32.totalorder %s80_s0, %s80_s0 }
  0x17   :  { %36 = vst [vmem:[#allocation5 + $0x30] sm:$0xff] %v29_v6 }
  0x18   :  { %p87_p11 = por %p86_p10, %p85_p9 }
  0x1a   :  { %p88_p12 = pnand %p87_p11, %p81_p8 }
  0x1c   :  { %91 = shalt.err (!%p88_p12)
}
  0x1d   :  { %s92_s24 = scalar_lea.hbm %s151_s1, 896 }
  0x1e   :  { %p93_p13 = scmp.ne.s32.totalorder %s151_s1, %s92_s24  ;;  %p96_p0 = scmp.lt.u32.totalorder %s92_s24, %s151_s1 }
  0x20   :  { %p98_p1 = pnand %p96_p0, %p93_p13 }
  0x22   :  { %101 = shalt.err (!%p98_p1)
}
  0x23   :  { %48 = dma.vmem_to_hbm [thread:$0]  %s43_s21, 896, %s151_s1, [#allocation4], %s107_s16, %s107_s16, %s108_s17  }
  0x24   :  { %104 = dma.done.wait [#allocation4], 896  }
  0x25   :  { %105 = vsyncadd [#allocation4], 4294966400 }
  0x26   :  { %52 = vsyncpa [#allocation3], 1 }
  0x27   :  { %53 = vsyncpa [#allocation4], 1 }

</bundles_post_ra>
